<compile_context>
chip_gen: v5e
topology: v5e:2x2
jax: 0.10.0
libtpu: 0.0.40
codegen_flags: <defaults>
</compile_context>

<pallas_src>
import jax
import jax.numpy as jnp
from jax.experimental import pallas as pl
from jax.experimental.pallas import tpu as pltpu


def _round_up(x, m):
    return (x + m - 1) // m * m


def _disc_kernel(x_ref,
                 w1_ref, b1_ref,
                 w2_ref, b2_ref,
                 w3_ref, b3_ref,
                 w4_ref, b4_ref,
                 o_ref):
    x = x_ref[...]                                             # (F, bt)

    # layer 1: (H, F) @ (F, bt) -> (H, bt)                      [MXU, no transpose]
    h = jnp.dot(w1_ref[...], x, preferred_element_type=jnp.float32)
    h = jnp.maximum(h + b1_ref[...], 0.0)                      # (H, bt), f32

    # layer 2: (H, H) @ (H, bt) -> (H, bt)                      [MXU, f32 activations]
    h = jnp.dot(w2_ref[...], h, preferred_element_type=jnp.float32)
    h = jnp.maximum(h + b2_ref[...], 0.0)

    # layer 3: (H, H) @ (H, bt) -> (H, bt)                      [MXU, f32 activations]
    h = jnp.dot(w3_ref[...], h, preferred_element_type=jnp.float32)
    h = jnp.maximum(h + b3_ref[...], 0.0)

    # layer 4 (H -> 1): VPU multiply + XLU sublane-reduce, lane-dense result.
    z = jnp.sum(h * w4_ref[...], axis=0, keepdims=True) + b4_ref[...]  # (1, bt)

    # Sigmoid epilogue (exp on the EUP slot).
    o_ref[...] = jax.nn.sigmoid(z).astype(o_ref.dtype)


def discriminator_forward(x, params, *, batch_tile=None, input_dtype=None):
    """Discriminator_Net forward pass as a single Pallas TPU kernel.

    x:      (B, state_action_space) float32
    params: dict with w1..w3 (out,in), w4 (hidden,1), b1..b3 (hidden,1), b4 (1,1)

    input_dtype=jnp.bfloat16 optionally narrows x and the weight stream on
    v6e/v7x; hidden activations remain f32 (results then deviate slightly
    from the f32 reference — keep None for bit-faithful 1e-5 accuracy, and
    skip entirely on v5e which has no bf16 VALU support).
    """
    B, F = x.shape
    H = params["w1"].shape[0]

    # --- batch tile selection -------------------------------------------------
    # The kernel is bound by the ~0.35us fixed per-grid-step cost, so tiles are
    # large (cap 8192).  When B >= 256 we force >= 2 tiles so the ("parallel",)
    # batch axis can shard across v7x's two TensorCores.  With the transposed
    # (F, bt) x layout an 8192-row tile costs ~0.5 MiB per x buffer plus a few
    # MiB of (32, bt) f32 intermediates — far inside the 32 MiB scoped VMEM.
    B128 = _round_up(B, 128)
    if batch_tile is None:
        if B128 >= 256:
            batch_tile = min(8192, _round_up((B128 + 1) // 2, 128))
        else:
            batch_tile = 128
    else:
        batch_tile = _round_up(batch_tile, 128)
    B_pad = _round_up(B, batch_tile)
    num_tiles = B_pad // batch_tile

    # Optional bf16 input/weight stream (f32 activations & accumulation kept).
    if input_dtype is not None:
        x = x.astype(input_dtype)
        params = dict(params)
        for k in ("w1", "w2", "w3", "w4"):
            params[k] = params[k].astype(input_dtype)

    if B_pad != B:
        x = jnp.pad(x, ((0, B_pad - B), (0, 0)))

    # Transpose in the wrapper: batch on lanes, features on sublanes.  This is
    # what removes the per-tile in-kernel transpose and the 12->128 lane pad.
    x_t = x.T                                                   # (F, B_pad)

    def full(a):
        # Weights/biases are tiny and constant across the grid; double-buffer
        # overhead is negligible.
        # TODO(synk): use pipeline_mode=pl.Buffered(1) once single-buffered
        # operands are confirmed supported on all target chips (pure hygiene).
        return pl.BlockSpec(a.shape, lambda i: (0, 0))

    in_specs = [
        pl.BlockSpec((F, batch_tile), lambda i: (0, i)),        # x_T, tiled on batch
        full(params["w1"]), full(params["b1"]),
        full(params["w2"]), full(params["b2"]),
        full(params["w3"]), full(params["b3"]),
        full(params["w4"]), full(params["b4"]),
    ]
    # Lane-dense output: each grid step writes a (1, batch_tile) slab.
    out_spec = pl.BlockSpec((1, batch_tile), lambda i: (0, i))

    weight_bytes = sum(int(v.size) * v.dtype.itemsize for v in params.values())
    cost = pl.CostEstimate(
        flops=2 * B_pad * (F * H + 2 * H * H + H),
        transcendentals=B_pad,                          # one exp per output
        bytes_accessed=B_pad * (F * x_t.dtype.itemsize + 4) + weight_bytes,
    )

    out = pl.pallas_call(
        _disc_kernel,
        out_shape=jax.ShapeDtypeStruct((1, B_pad), jnp.float32),
        grid_spec=pltpu.PrefetchScalarGridSpec(
            num_scalar_prefetch=0,
            grid=(num_tiles,),
            in_specs=in_specs,
            out_specs=out_spec,
        ),
        compiler_params=pltpu.CompilerParams(
            dimension_semantics=("parallel",),
            # Explicit scoped-VMEM budget: safe on v5e/v6e (128 MiB physical)
            # and within v7x's 64 MiB physical, and generous enough for the
            # double-buffered 8192-row transposed x tiles + intermediates.
            vmem_limit_bytes=32 * 1024 * 1024,
        ),
        cost_estimate=cost,
    )(x_t,
      params["w1"], params["b1"],
      params["w2"], params["b2"],
      params["w3"], params["b3"],
      params["w4"], params["b4"])

    return out[0, :B][:, None]


def init_params(key, state_action_space, hidden_dim):
    """xavier_uniform weights (gain=1), zero biases, mirroring weights_init_."""
    def xavier(k, out_f, in_f):
        limit = jnp.sqrt(6.0 / (in_f + out_f))
        return jax.random.uniform(k, (out_f, in_f), jnp.float32,
                                  minval=-limit, maxval=limit)

    k1, k2, k3, k4 = jax.random.split(key, 4)
    return {
        "w1": xavier(k1, hidden_dim, state_action_space),      # (H, F)
        "b1": jnp.zeros((hidden_dim, 1), jnp.float32),
        "w2": xavier(k2, hidden_dim, hidden_dim),               # (H, H)
        "b2": jnp.zeros((hidden_dim, 1), jnp.float32),
        "w3": xavier(k3, hidden_dim, hidden_dim),               # (H, H)
        "b3": jnp.zeros((hidden_dim, 1), jnp.float32),
        "w4": xavier(k4, 1, hidden_dim).T,                      # stored (H, 1)
        "b4": jnp.zeros((1, 1), jnp.float32),
    }


def reference_forward(x, p):
    h = jax.nn.relu(x @ p["w1"].T + p["b1"][:, 0])
    h = jax.nn.relu(h @ p["w2"].T + p["b2"][:, 0])
    h = jax.nn.relu(h @ p["w3"].T + p["b3"][:, 0])
    return jax.nn.sigmoid(h @ p["w4"] + p["b4"][:, 0])


if __name__ == "__main__":
    state_action_space = 12   # e.g. state_dim + action_dim
    hidden_dim = 32

    key = jax.random.PRNGKey(0)
    k_params, k_x1, k_x2 = jax.random.split(key, 3)
    params = init_params(k_params, state_action_space, hidden_dim)

    # Small demo batch (single grid step, padded to one 128-row tile).
    x_small = jax.random.normal(k_x1, (8, state_action_space), jnp.float32)
    out_small = jax.block_until_ready(discriminator_forward(x_small, params))
    ref_small = reference_forward(x_small, params)
    assert out_small.shape == (8, 1)
    assert jnp.allclose(out_small, ref_small, atol=1e-5, rtol=1e-5), \
        "mismatch vs reference (small batch)"

    # Ragged batch with the default tile policy: B=260 -> B128=384 -> two
    # 256-row tiles; exercises padding, the >=2-tile (megacore) path and the
    # lane-dense slab output path.
    x_big = jax.random.normal(k_x2, (260, state_action_space), jnp.float32)
    out_big = jax.block_until_ready(discriminator_forward(x_big, params))
    ref_big = reference_forward(x_big, params)
    assert out_big.shape == (260, 1)
    assert jnp.allclose(out_big, ref_big, atol=1e-5, rtol=1e-5), \
        "mismatch vs reference (multi-tile batch)"

    # Explicit small tile to also cover a 3-step pipelined grid.
    out_tiled = jax.block_until_ready(
        discriminator_forward(x_big, params, batch_tile=128))
    assert jnp.allclose(out_tiled, ref_big, atol=1e-5, rtol=1e-5), \
        "mismatch vs reference (explicit batch_tile)"

    print("KERNEL_OK")
</pallas_src>

<mosaic_0001>
module attributes {stable_mosaic.version = 11 : i64} {
  func.func @_disc_kernel(%arg0: i32, %arg1: memref<12x128xf32, #tpu.memory_space<vmem>>, %arg2: memref<32x12xf32, #tpu.memory_space<vmem>>, %arg3: memref<32x1xf32, #tpu.memory_space<vmem>>, %arg4: memref<32x32xf32, #tpu.memory_space<vmem>>, %arg5: memref<32x1xf32, #tpu.memory_space<vmem>>, %arg6: memref<32x32xf32, #tpu.memory_space<vmem>>, %arg7: memref<32x1xf32, #tpu.memory_space<vmem>>, %arg8: memref<32x1xf32, #tpu.memory_space<vmem>>, %arg9: memref<1x1xf32, #tpu.memory_space<vmem>>, %arg10: memref<1x128xf32, #tpu.memory_space<vmem>>) attributes {dimension_semantics = [#tpu.dimension_semantics<parallel>], iteration_bounds = array<i64: 1>, scalar_prefetch = 0 : i64, scratch_operands = 0 : i64, tpu.core_type = #tpu.core_type<tc>, window_params = [{transform_indices = @transform_0, window_bounds = array<i64: 12, 128>}, {pipeline_mode = #tpu.pipeline_mode<synchronous>, transform_indices = @transform_1, window_bounds = array<i64: 32, 12>}, {pipeline_mode = #tpu.pipeline_mode<synchronous>, transform_indices = @transform_2, window_bounds = array<i64: 32, 1>}, {pipeline_mode = #tpu.pipeline_mode<synchronous>, transform_indices = @transform_3, window_bounds = array<i64: 32, 32>}, {pipeline_mode = #tpu.pipeline_mode<synchronous>, transform_indices = @transform_4, window_bounds = array<i64: 32, 1>}, {pipeline_mode = #tpu.pipeline_mode<synchronous>, transform_indices = @transform_5, window_bounds = array<i64: 32, 32>}, {pipeline_mode = #tpu.pipeline_mode<synchronous>, transform_indices = @transform_6, window_bounds = array<i64: 32, 1>}, {pipeline_mode = #tpu.pipeline_mode<synchronous>, transform_indices = @transform_7, window_bounds = array<i64: 32, 1>}, {pipeline_mode = #tpu.pipeline_mode<synchronous>, transform_indices = @transform_8, window_bounds = array<i64: 1, 1>}, {transform_indices = @transform_9, window_bounds = array<i64: 1, 128>}]} {
    %c0 = arith.constant 0 : index
    %c0_0 = arith.constant 0 : index
    %0 = vector.load %arg1[%c0, %c0_0] : memref<12x128xf32, #tpu.memory_space<vmem>>, vector<12x128xf32>
    %c0_1 = arith.constant 0 : index
    %c0_2 = arith.constant 0 : index
    %1 = vector.load %arg2[%c0_1, %c0_2] : memref<32x12xf32, #tpu.memory_space<vmem>>, vector<32x12xf32>
    %cst = arith.constant dense<0.000000e+00> : vector<32x128xf32>
    %2 = tpu.matmul %1, %0, %cst {dimension_numbers = #tpu.dot_dimension_numbers<[1], [0], [0], [1], [0, 0, 1, 1], [], []>} : vector<32x12xf32>, vector<12x128xf32>, vector<32x128xf32> -> vector<32x128xf32>
    %c0_3 = arith.constant 0 : index
    %c0_4 = arith.constant 0 : index
    %3 = vector.load %arg3[%c0_3, %c0_4] : memref<32x1xf32, #tpu.memory_space<vmem>>, vector<32x1xf32>
    %4 = vector.broadcast %3 : vector<32x1xf32> to vector<32x128xf32>
    %5 = arith.addf %2, %4 : vector<32x128xf32>
    %cst_5 = arith.constant 0.000000e+00 : f32
    %6 = vector.broadcast %cst_5 : f32 to vector<32x128xf32>
    %7 = arith.maximumf %5, %6 : vector<32x128xf32>
    %c0_6 = arith.constant 0 : index
    %c0_7 = arith.constant 0 : index
    %8 = vector.load %arg4[%c0_6, %c0_7] : memref<32x32xf32, #tpu.memory_space<vmem>>, vector<32x32xf32>
    %cst_8 = arith.constant dense<0.000000e+00> : vector<32x128xf32>
    %9 = tpu.matmul %8, %7, %cst_8 {dimension_numbers = #tpu.dot_dimension_numbers<[1], [0], [0], [1], [0, 0, 1, 1], [], []>} : vector<32x32xf32>, vector<32x128xf32>, vector<32x128xf32> -> vector<32x128xf32>
    %c0_9 = arith.constant 0 : index
    %c0_10 = arith.constant 0 : index
    %10 = vector.load %arg5[%c0_9, %c0_10] : memref<32x1xf32, #tpu.memory_space<vmem>>, vector<32x1xf32>
    %11 = vector.broadcast %10 : vector<32x1xf32> to vector<32x128xf32>
    %12 = arith.addf %9, %11 : vector<32x128xf32>
    %cst_11 = arith.constant 0.000000e+00 : f32
    %13 = vector.broadcast %cst_11 : f32 to vector<32x128xf32>
    %14 = arith.maximumf %12, %13 : vector<32x128xf32>
    %c0_12 = arith.constant 0 : index
    %c0_13 = arith.constant 0 : index
    %15 = vector.load %arg6[%c0_12, %c0_13] : memref<32x32xf32, #tpu.memory_space<vmem>>, vector<32x32xf32>
    %cst_14 = arith.constant dense<0.000000e+00> : vector<32x128xf32>
    %16 = tpu.matmul %15, %14, %cst_14 {dimension_numbers = #tpu.dot_dimension_numbers<[1], [0], [0], [1], [0, 0, 1, 1], [], []>} : vector<32x32xf32>, vector<32x128xf32>, vector<32x128xf32> -> vector<32x128xf32>
    %c0_15 = arith.constant 0 : index
    %c0_16 = arith.constant 0 : index
    %17 = vector.load %arg7[%c0_15, %c0_16] : memref<32x1xf32, #tpu.memory_space<vmem>>, vector<32x1xf32>
    %18 = vector.broadcast %17 : vector<32x1xf32> to vector<32x128xf32>
    %19 = arith.addf %16, %18 : vector<32x128xf32>
    %cst_17 = arith.constant 0.000000e+00 : f32
    %20 = vector.broadcast %cst_17 : f32 to vector<32x128xf32>
    %21 = arith.maximumf %19, %20 : vector<32x128xf32>
    %c0_18 = arith.constant 0 : index
    %c0_19 = arith.constant 0 : index
    %22 = vector.load %arg8[%c0_18, %c0_19] : memref<32x1xf32, #tpu.memory_space<vmem>>, vector<32x1xf32>
    %23 = vector.broadcast %22 : vector<32x1xf32> to vector<32x128xf32>
    %24 = arith.mulf %21, %23 : vector<32x128xf32>
    %cst_20 = arith.constant dense<0.000000e+00> : vector<128xf32>
    %25 = vector.multi_reduction <add>, %24, %cst_20 [0] : vector<32x128xf32> to vector<128xf32>
    %26 = vector.shape_cast %25 : vector<128xf32> to vector<1x128xf32>
    %c0_21 = arith.constant 0 : index
    %c0_22 = arith.constant 0 : index
    %27 = vector.load %arg9[%c0_21, %c0_22] : memref<1x1xf32, #tpu.memory_space<vmem>>, vector<1x1xf32>
    %28 = vector.broadcast %27 : vector<1x1xf32> to vector<1x128xf32>
    %29 = arith.addf %26, %28 : vector<1x128xf32>
    %30 = arith.negf %29 : vector<1x128xf32>
    %31 = math.exp %30 : vector<1x128xf32>
    %cst_23 = arith.constant 1.000000e+00 : f32
    %32 = vector.broadcast %cst_23 : f32 to vector<1x128xf32>
    %33 = arith.addf %32, %31 : vector<1x128xf32>
    %34 = arith.divf %32, %33 : vector<1x128xf32>
    %c0_24 = arith.constant 0 : index
    %c0_25 = arith.constant 0 : index
    %35 = vector.load %arg10[%c0_24, %c0_25] : memref<1x128xf32, #tpu.memory_space<vmem>>, vector<1x128xf32>
    tpu.vector_store %arg10[%c0_24, %c0_25], %34 {strides = array<i32>} : memref<1x128xf32, #tpu.memory_space<vmem>>, vector<1x128xf32>,
    return
  }
  func.func @transform_0(%arg0: i32) -> (i32, i32) {
    %c0_i32 = arith.constant 0 : i32
    %c0_i32_0 = arith.constant 0 : i32
    return %c0_i32, %arg0 : i32, i32
  }
  func.func @transform_1(%arg0: i32) -> (i32, i32) {
    %c0_i32 = arith.constant 0 : i32
    %c0_i32_0 = arith.constant 0 : i32
    %c0_i32_1 = arith.constant 0 : i32
    return %c0_i32, %c0_i32_0 : i32, i32
  }
  func.func @transform_2(%arg0: i32) -> (i32, i32) {
    %c0_i32 = arith.constant 0 : i32
    %c0_i32_0 = arith.constant 0 : i32
    %c0_i32_1 = arith.constant 0 : i32
    return %c0_i32, %c0_i32_0 : i32, i32
  }
  func.func @transform_3(%arg0: i32) -> (i32, i32) {
    %c0_i32 = arith.constant 0 : i32
    %c0_i32_0 = arith.constant 0 : i32
    %c0_i32_1 = arith.constant 0 : i32
    return %c0_i32, %c0_i32_0 : i32, i32
  }
  func.func @transform_4(%arg0: i32) -> (i32, i32) {
    %c0_i32 = arith.constant 0 : i32
    %c0_i32_0 = arith.constant 0 : i32
    %c0_i32_1 = arith.constant 0 : i32
    return %c0_i32, %c0_i32_0 : i32, i32
  }
  func.func @transform_5(%arg0: i32) -> (i32, i32) {
    %c0_i32 = arith.constant 0 : i32
    %c0_i32_0 = arith.constant 0 : i32
    %c0_i32_1 = arith.constant 0 : i32
    return %c0_i32, %c0_i32_0 : i32, i32
  }
  func.func @transform_6(%arg0: i32) -> (i32, i32) {
    %c0_i32 = arith.constant 0 : i32
    %c0_i32_0 = arith.constant 0 : i32
    %c0_i32_1 = arith.constant 0 : i32
    return %c0_i32, %c0_i32_0 : i32, i32
  }
  func.func @transform_7(%arg0: i32) -> (i32, i32) {
    %c0_i32 = arith.constant 0 : i32
    %c0_i32_0 = arith.constant 0 : i32
    %c0_i32_1 = arith.constant 0 : i32
    return %c0_i32, %c0_i32_0 : i32, i32
  }
  func.func @transform_8(%arg0: i32) -> (i32, i32) {
    %c0_i32 = arith.constant 0 : i32
    %c0_i32_0 = arith.constant 0 : i32
    %c0_i32_1 = arith.constant 0 : i32
    return %c0_i32, %c0_i32_0 : i32, i32
  }
  func.func @transform_9(%arg0: i32) -> (i32, i32) {
    %c0_i32 = arith.constant 0 : i32
    %c0_i32_0 = arith.constant 0 : i32
    return %c0_i32, %arg0 : i32, i32
  }
}

</mosaic_0001>

<bundles_post_ra>
// kernel: tpu_custom_call.1
= control target key start
LH: loop header
LB: loop body
LE: loop exit
PB: predicated region body
PF: predicated region fallthrough
CT: control target
= control target key end

     0   :  { %s560_s0 = inlined_call_operand.vmem [shape: f32[12,128], index: 0, kind: input, shape index: {}]   ;;  %s561_s1 = inlined_call_operand.vmem [shape: f32[32,12], index: 1, kind: input, shape index: {}]   ;;  %s562_s2 = inlined_call_operand.vmem [shape: f32[32,1], index: 2, kind: input, shape index: {}]   ;;  %s563_s3 = inlined_call_operand.vmem [shape: f32[32,32], index: 3, kind: input, shape index: {}]   ;;  %s564_s4 = inlined_call_operand.vmem [shape: f32[32,1], index: 4, kind: input, shape index: {}]   ;;  %s565_s5 = inlined_call_operand.vmem [shape: f32[32,32], index: 5, kind: input, shape index: {}]   ;;  %s566_s6 = inlined_call_operand.vmem [shape: f32[32,1], index: 6, kind: input, shape index: {}]   ;;  %s567_s7 = inlined_call_operand.vmem [shape: f32[32,1], index: 7, kind: input, shape index: {}]   ;;  %s568_s8 = inlined_call_operand.<no memory space> [shape: f32[1,1], index: 8, kind: input, shape index: {}]   ;;  %s569_s9 = inlined_call_operand.hbm [shape: f32[1,128], index: 9, kind: output, shape index: {}]  }
   0x1   :  { %v14_v0 = vstv %s568_s8 }
   0x2   :  { %15 = vst [vmem:[#allocation2] sm:$0x1] %v14_v0 }
   0x3   :  { %v36_v1 = vld [vmem:[%s560_s0 + $0x8] sm:$0xf]  ;;  %vm78_vm0 = vcmask 1043456   ;;  %v44_v2 = vld [vmem:[%s562_s2 + $0x18] sm:$0xff]  ;;  %v400_v4 = vmov 0   ;;  %v35_v5 = vld [vmem:[%s560_s0] sm:$0xff] }
   0x4   :  { %v42_v3 = vld [vmem:[%s562_s2 + $0x8] sm:$0xff]  ;;  %368 = vset.pattern.permute.xlu1 %v400_v4  ;;  %367 = vset.pattern.permute.xlu0 %v400_v4  ;;  %v37_v6 = vld [vmem:[%s561_s1] sm:$0xff]  ;;  %vm65_vm1 = vcmask 97280  }
   0x5   :  { %343 = vmatpush.msk.msra.mxu0 %vm78_vm0, %v36_v1  ;;  %62 = vperm.xlu0 %367, %v44_v2  }
   0x6   :  { %52 = vperm.xlu1 %368, %v42_v3   ;;  %369 = vset.pattern.permute.xlu2 %v400_v4 }
   0x7   :  { %97 = vmatpush.msra.mxu0 %v35_v5 }
   0x8   :  { %344 = vmatmul.msk.f32.vlgmr.msra.gmra.mxu0 %vm65_vm1, %v37_v6 }
   0x9   :  { %16 = vsyncpa [#allocation4], 0  ;;  %v43_v7 = vld [vmem:[%s562_s2 + $0x10] sm:$0xff]  ;;  %v41_v8 = vld [vmem:[%s562_s2] sm:$0xff]  ;;  %vm143_vm2 = vcmask 261120  }
   0xa   :  { %v38_v9 = vld [vmem:[%s561_s1 + $0x8] sm:$0xff]  ;;  %v119_v11 = vld [vmem:[%s564_s4] sm:$0xff]  ;;  %v39_v12 = vld [vmem:[%s561_s1 + $0x10] sm:$0xff] }
   0xb   :  { %v120_v10 = vld [vmem:[%s564_s4 + $0x8] sm:$0xff]  ;;  %v195_v14 = vld [vmem:[%s566_s6 + $0x10] sm:$0xff]  ;;  %v40_v15 = vld [vmem:[%s561_s1 + $0x18] sm:$0xff]  ;;  %s334_s1 = sshll.u32 %s569_s9, 4  ;;  %s335_s1 = int_to_ptr.hbm [resolvable:$true] %s334_s1 }
   0xc   :  { %v194_v13 = vld [vmem:[%s566_s6 + $0x8] sm:$0xff]  ;;  %v262_v16 = vld [vmem:[%s567_s7] sm:$0xff]  ;;  %v265_v18 = vld [vmem:[%s567_s7 + $0x18] sm:$0xff] }
   0xd   :  { %57 = vperm.xlu0 %367, %v43_v7   ;;  %v263_v17 = vld [vmem:[%s567_s7 + $0x8] sm:$0xff]  ;;  %v299_v19 = vld [vmem:[#allocation2] sm:$0x1]  ;;  %v122_v25 = vld [vmem:[%s564_s4 + $0x18] sm:$0xff] }
   0xe   :  { %47 = vperm.xlu1 %368, %v41_v8   ;;  %140 = vperm.xlu2 %369, %v122_v25   ;;  %v121_v32 = vld [vmem:[%s564_s4 + $0x10] sm:$0xff]  ;;  %v115_v38 = vld [vmem:[%s563_s3] sm:$0xff]  ;;  %v116_v39 = vld [vmem:[%s563_s3 + $0x8] sm:$0xff] }
   0xf   :  { %v193_v40 = vld [vmem:[%s566_s6] sm:$0xff]  ;;  %v117_v41 = vld [vmem:[%s563_s3 + $0x10] sm:$0xff]  ;;  %v196_v42 = vld [vmem:[%s566_s6 + $0x18] sm:$0xff] }
  0x10   :  { %345 = vmatmul.msk.f32.gmra.mxu0 %vm65_vm1, %v38_v9  ;;  %v118_v43 = vld [vmem:[%s563_s3 + $0x18] sm:$0xff]  ;;  %v264_v44 = vld [vmem:[%s567_s7 + $0x10] sm:$0xff]  ;;  %v189_v61 = vld [vmem:[%s565_s5] sm:$0xff] }
  0x11   :  { %v190_v62 = vld [vmem:[%s565_s5 + $0x8] sm:$0xff]  ;;  %v191_v63 = vld [vmem:[%s565_s5 + $0x10] sm:$0xff]  ;;  %v192_v0 = vld [vmem:[%s565_s5 + $0x18] sm:$0xff]  ;;  %s401_s5 = smov [#allocation3]  }
  0x12   :  { %s332_s18 = sshll.u32 %s401_s5, 4  ;;  %s333_s18 = int_to_ptr.vmem [resolvable:$true] %s332_s18 }
  0x15   :  { %130 = vperm.xlu0 %367, %v120_v10  }
  0x16   :  { %125 = vperm.xlu1 %368, %v119_v11   ;;  %135 = vperm.xlu2 %369, %v121_v32  }
  0x18   :  { %346 = vmatmul.msk.f32.gmra.mxu0 %vm65_vm1, %v39_v12 }
  0x1d   :  { %204 = vperm.xlu0 %367, %v194_v13  }
  0x1e   :  { %209 = vperm.xlu1 %368, %v195_v14   ;;  %199 = vperm.xlu2 %369, %v193_v40  }
  0x20   :  { %347 = vmatmul.msk.f32.gmra.mxu0 %vm65_vm1, %v40_v15 }
  0x25   :  { %268 = vperm.xlu0 %367, %v262_v16  }
  0x26   :  { %273 = vperm.xlu1 %368, %v263_v17   ;;  %214 = vperm.xlu2 %369, %v196_v42  }
  0x2d   :  { %283 = vperm.xlu0 %367, %v265_v18  }
  0x2e   :  { %302 = vperm.xlu1 %368, %v299_v19   ;;  %278 = vperm.xlu2 %369, %v264_v44  }
  0x68   :  { %v141_v46 = vpop.permute.xlu2 %140 }
  0x70   :  { %v136_v48 = vpop.permute.xlu2 %135 }
  0x77   :  { %v63_v22 = vpop.permute.xlu0 %62 }
  0x78   :  { %v53_v24 = vpop.permute.xlu1 %52  ;;  %v200_v1 = vpop.permute.xlu2 %199 }
  0x7f   :  { %v58_v26 = vpop.permute.xlu0 %57 }
  0x80   :  { %v48_v33 = vpop.permute.xlu1 %47  ;;  %v215_v5 = vpop.permute.xlu2 %214 }
  0x85   :  { %v99_v20 = vpop.f32.mrf.mxu0 }
  0x86   :  { %v100_v34 = vadd.f32 %v99_v20, %v48_v33 }
  0x87   :  { %v131_v52 = vpop.permute.xlu0 %130 }
  0x88   :  { %v111_v37 = vmax.f32 %v100_v34, 0.0  ;;  %v126_v56 = vpop.permute.xlu1 %125  ;;  %v279_v17 = vpop.permute.xlu2 %278 }
  0x8d   :  { %v102_v21 = vpop.f32.mrf.mxu0 }
  0x8e   :  { %v103_v30 = vadd.f32 %v102_v21, %v53_v24 }
  0x8f   :  { %v205_v2 = vpop.permute.xlu0 %204 }
  0x90   :  { %v112_v36 = vmax.f32 %v103_v30, 0.0  ;;  %v210_v4 = vpop.permute.xlu1 %209 }
  0x95   :  { %v105_v23 = vpop.f32.mrf.mxu0 }
  0x96   :  { %v106_v28 = vadd.f32 %v105_v23, %v58_v26 }
  0x97   :  { %v269_v11 = vpop.permute.xlu0 %268 }
  0x98   :  { %v113_v35 = vmax.f32 %v106_v28, 0.0  ;;  %v274_v15 = vpop.permute.xlu1 %273 }
  0x9d   :  { %v108_v27 = vpop.f32.mrf.mxu0 }
  0x9e   :  { %v109_v29 = vadd.f32 %v108_v27, %v63_v22 }
  0x9f   :  { %v284_v24 = vpop.permute.xlu0 %283 }
  0xa0   :  { %v114_v31 = vmax.f32 %v109_v29, 0.0  ;;  %v303_v32 = vpop.permute.xlu1 %302 }
  0xa1   :  { %v305_v34 = vperm.slane %v303_v32, 0 }
  0xa2   :  { %168 = vmatpush.msra.mxu1 %v114_v31  ;;  %357 = vmatpush.msra.mxu3 %v114_v31 }
  0xa4   :  { %169 = vmatpush.msra.mxu1 %v113_v35  ;;  %358 = vmatpush.msra.mxu3 %v113_v35 }
  0xa6   :  { %170 = vmatpush.msra.mxu1 %v112_v36  ;;  %359 = vmatpush.msra.mxu3 %v112_v36 }
  0xa8   :  { %171 = vmatpush.msra.mxu1 %v111_v37  ;;  %360 = vmatpush.msra.mxu3 %v111_v37 }
  0xa9   :  { %348 = vmatmul.msk.f32.vlgmr.msra.gmra.mxu1 %vm143_vm2, %v115_v38  ;;  %349 = vmatmul.msk.f32.vlgmr.msra.gmra.mxu3 %vm143_vm2, %v116_v39 }
  0xb1   :  { %350 = vmatmul.msk.f32.gmra.mxu3 %vm143_vm2, %v117_v41 }
  0xb9   :  { %351 = vmatmul.msk.f32.gmra.mxu3 %vm143_vm2, %v118_v43 }
 0x126   :  { %v173_v53 = vpop.f32.mrf.mxu1 }
 0x127   :  { %v174_v57 = vadd.f32 %v173_v53, %v126_v56 }
 0x129   :  { %v185_v60 = vmax.f32 %v174_v57, 0.0 }
 0x12c   :  { %v176_v45 = vpop.f32.mrf.mxu3 }
 0x12d   :  { %v177_v54 = vadd.f32 %v176_v45, %v131_v52 }
 0x12f   :  { %v186_v59 = vmax.f32 %v177_v54, 0.0 }
 0x134   :  { %v179_v47 = vpop.f32.mrf.mxu3 }
 0x135   :  { %v180_v50 = vadd.f32 %v179_v47, %v136_v48 }
 0x137   :  { %v187_v58 = vmax.f32 %v180_v50, 0.0 }
 0x13c   :  { %v182_v49 = vpop.f32.mrf.mxu3 }
 0x13d   :  { %v183_v51 = vadd.f32 %v182_v49, %v141_v46 }
 0x13f   :  { %v188_v55 = vmax.f32 %v183_v51, 0.0 }
 0x141   :  { %241 = vmatpush.msrb.mxu1 %v188_v55  ;;  %361 = vmatpush.msra.mxu2 %v188_v55 }
 0x143   :  { %242 = vmatpush.msrb.mxu1 %v187_v58  ;;  %362 = vmatpush.msra.mxu2 %v187_v58 }
 0x145   :  { %243 = vmatpush.msrb.mxu1 %v186_v59  ;;  %363 = vmatpush.msra.mxu2 %v186_v59 }
 0x147   :  { %244 = vmatpush.msrb.mxu1 %v185_v60  ;;  %364 = vmatpush.msra.mxu2 %v185_v60 }
 0x148   :  { %352 = vmatmul.msk.f32.vlgmr.msrb.gmra.mxu1 %vm143_vm2, %v189_v61  ;;  %353 = vmatmul.msk.f32.vlgmr.msra.gmra.mxu2 %vm143_vm2, %v190_v62 }
 0x150   :  { %354 = vmatmul.msk.f32.gmra.mxu2 %vm143_vm2, %v191_v63 }
 0x158   :  { %355 = vmatmul.msk.f32.gmra.mxu2 %vm143_vm2, %v192_v0 }
 0x1c5   :  { %v246_v6 = vpop.f32.mrf.mxu1 }
 0x1c6   :  { %v247_v9 = vadd.f32 %v246_v6, %v200_v1 }
 0x1c8   :  { %v258_v13 = vmax.f32 %v247_v9, 0.0 }
 0x1ca   :  { %v286_v19 = vmul.f32 %v269_v11, %v258_v13 }
 0x1cb   :  { %v249_v3 = vpop.f32.mrf.mxu2 }
 0x1cc   :  { %v250_v7 = vadd.f32 %v249_v3, %v205_v2 }
 0x1ce   :  { %v259_v12 = vmax.f32 %v250_v7, 0.0 }
 0x1d0   :  { %v287_v16 = vmul.f32 %v274_v15, %v259_v12 }
 0x1d2   :  { %v290_v22 = vadd.f32 %v287_v16, %v286_v19 }
 0x1d3   :  { %v252_v8 = vpop.f32.mrf.mxu2 }
 0x1d4   :  { %v253_v10 = vadd.f32 %v252_v8, %v210_v4 }
 0x1d6   :  { %v260_v14 = vmax.f32 %v253_v10, 0.0 }
 0x1d8   :  { %v288_v20 = vmul.f32 %v279_v17, %v260_v14 }
 0x1da   :  { %v291_v25 = vadd.f32 %v290_v22, %v288_v20 }
 0x1db   :  { %v255_v18 = vpop.f32.mrf.mxu2 }
 0x1dc   :  { %v256_v21 = vadd.f32 %v255_v18, %v215_v5 }
 0x1de   :  { %v261_v23 = vmax.f32 %v256_v21, 0.0 }
 0x1e0   :  { %v289_v26 = vmul.f32 %v284_v24, %v261_v23 }
 0x1e2   :  { %v292_v27 = vadd.f32 %v291_v25, %v289_v26 }
 0x1e4   :  { %v293_v28 = vrot.slane %v292_v27, 4 }
 0x1e6   :  { %v294_v29 = vadd.f32 %v293_v28, %v292_v27 }
 0x1e8   :  { %v295_v30 = vrot.slane %v294_v29, 2 }
 0x1ea   :  { %v296_v31 = vadd.f32 %v295_v30, %v294_v29 }
 0x1ec   :  { %v297_v33 = vrot.slane %v296_v31, 1 }
 0x1ee   :  { %v298_v35 = vadd.f32 %v297_v33, %v296_v31 }
 0x1f0   :  { %v306_v36 = vadd.f32 %v305_v34, %v298_v35 }
 0x1f2   :  { %v356_v37 = vmul.f32 -1.442695, %v306_v36 }
 0x1f4   :  { %370 = vpow2.f32 %v356_v37 }
 0x1fa   :  { %v371_v38 = vpop.eup %370 }
 0x1fb   :  { %v310_v39 = vadd.f32 1.0, %v371_v38 }
 0x1fd   :  { %372 = vrcp.f32 %v310_v39  ;;  %v322_v43 = vand.u32 2147483648, %v310_v39  ;;  %v320_v45 = vand.u32 2147483647, %v310_v39  ;;  %vm316_vm4 = vweird.f32 %v310_v39 }
 0x1ff   :  { %v323_v47 = vor.u32 1.1754944e-38, %v322_v43  ;;  %vm321_vm6 = vcmp.eq.f32.partialorder %v320_v45, 8.507059e+37 }
 0x203   :  { %v373_v40 = vpop.eup %372 }
 0x204   :  { %v312_v41 = vmul.f32 %v373_v40, %v310_v39  ;;  %vm317_vm3 = vweird.f32 %v373_v40 }
 0x205   :  { %vm318_vm5 = vmor %vm316_vm4, %vm317_vm3 }
 0x206   :  { %v313_v42 = vsub.f32 1.0, %v312_v41 }
 0x208   :  { %v314_v44 = vmul.f32 %v373_v40, %v313_v42 }
 0x20a   :  { %v315_v46 = vadd.f32 %v373_v40, %v314_v44 }
 0x20c   :  { %v319_v48 = vsel %vm318_vm5, %v373_v40, %v315_v46 }
 0x20d   :  { %v324_v49 = vsel %vm321_vm6, %v323_v47, %v319_v48 }
 0x20e   :  { %326 = vst [vmem:[#allocation3] sm:$0x1] %v324_v49 }
 0x20f   :  { %337 = dma.vmem_to_hbm [thread:$0]  %s333_s18, 16, %s335_s1, [#allocation4]  }
 0x210   :  { %398 = dma.done.wait [#allocation4], 16  }
 0x211   :  { %399 = vsyncadd [#allocation4], 4294967280 }
 0x212   :  { %342 = vsyncpa [#allocation4], 1 }

</bundles_post_ra>
